<compile_context>
chip_gen: v7x
topology: tpu7x:2x2x1
jax: 0.10.0
libtpu: 0.0.40
codegen_flags: <defaults>
</compile_context>

<pallas_src>
import functools

import jax
import jax.numpy as jnp
from jax.experimental import pallas as pl
from jax.experimental.pallas import tpu as pltpu


NEG_BIG = -9.0e15  # matches -9000000000000000.0 in the PyTorch code


def _cross_gat_kernel(xa_ref, xv_ref, adj_ref, w_ref, a_ref, out_ref, *,
                      alpha, act):
    # xa_ref / xv_ref: (block_b, t, Fin)   adj_ref: (block_b, N, N)
    # w_ref: (Fin, Fout)   a_ref: (2, Fout)   out_ref: (block_b, N, Fout)
    bb, t, fin = xa_ref.shape
    n = 2 * t
    fout = w_ref.shape[1]
    cdt = xa_ref.dtype                      # MXU compute dtype (bf16 stays bf16)

    # h = concat([x_a, x_v], node axis) assembled directly in VMEM.
    h = jnp.concatenate([xa_ref[...], xv_ref[...]], axis=1)       # (bb, n, fin)

    # Wh = h @ W with batch folded into rows so the MXU sees bb*n rows at once.
    w = w_ref[...].astype(cdt)
    wh = jnp.dot(h.reshape(bb * n, fin), w,
                 preferred_element_type=jnp.float32)              # (bb*n, fout)
    wh = wh.reshape(bb, n, fout)                                  # f32

    # Attention logits: a-projections as VPU multiply + cross-lane reduce.
    a_rows = a_ref[...].astype(jnp.float32)                       # (2, fout)
    wh1 = jnp.sum(wh * a_rows[0:1, :], axis=-1, keepdims=True)    # (bb, n, 1)
    wh2 = jnp.sum(wh * a_rows[1:2, :], axis=-1)                   # (bb, n)
    e = wh1 + wh2[:, None, :]                                     # (bb, n, n)
    e = jnp.where(e > 0, e, alpha * e)                            # LeakyReLU

    # Mask with adjacency (>0 test works for float/int8/bool) and row-softmax.
    att = jnp.where(adj_ref[...] > 0, e, NEG_BIG)
    att = jnp.exp(att - jnp.max(att, axis=-1, keepdims=True))
    att = att / jnp.sum(att, axis=-1, keepdims=True)

    # TODO(synk): attention dropout (p = self.dropout) not applied here.

    # h' = att @ Wh (batched MXU matmul, f32 accumulation).
    h_prime = jnp.einsum("bij,bjo->bio", att.astype(cdt), wh.astype(cdt),
                         preferred_element_type=jnp.float32)      # (bb, n, fout)

    if act:
        # ELU: negative branch = exp(x) - 1, computed on min(x, 0) so the
        # untaken branch never overflows; f32 abs error << test tolerance.
        neg = jnp.minimum(h_prime, 0.0)
        h_prime = jnp.where(h_prime > 0, h_prime, jnp.exp(neg) - 1.0)

    out_ref[...] = h_prime.astype(out_ref.dtype)


def cross_gat_layer(x_a, x_v, adj, W, a, *, alpha=0.1, act=True, block_b=8):
    """Pallas implementation of CrossGATLayer.forward (eval mode, dropout=0)."""
    bs, t, fin = x_a.shape
    fout = W.shape[1]
    n = 2 * t
    out_dtype = x_a.dtype

    # Block several batch elements per grid step; pad batch if needed.
    block_b = max(1, min(block_b, bs))
    pad = (-bs) % block_b
    if pad:
        x_a = jnp.pad(x_a, ((0, pad), (0, 0), (0, 0)))
        x_v = jnp.pad(x_v, ((0, pad), (0, 0), (0, 0)))
        adj = jnp.pad(adj, ((0, pad), (0, 0), (0, 0)))
    bsp = bs + pad

    # a as two (Fout,) rows: row 0 = a[:Fout, 0], row 1 = a[Fout:, 0].
    a_rows = a.reshape(2, fout)

    kernel = functools.partial(_cross_gat_kernel, alpha=alpha, act=act)

    h_prime = pl.pallas_call(
        kernel,
        out_shape=jax.ShapeDtypeStruct((bsp, n, fout), out_dtype),
        grid_spec=pltpu.PrefetchScalarGridSpec(
            num_scalar_prefetch=0,
            grid=(bsp // block_b,),
            in_specs=[
                pl.BlockSpec((block_b, t, fin), lambda b: (b, 0, 0)),   # x_a
                pl.BlockSpec((block_b, t, fin), lambda b: (b, 0, 0)),   # x_v
                pl.BlockSpec((block_b, n, n), lambda b: (b, 0, 0)),     # adj
                pl.BlockSpec((fin, fout), lambda b: (0, 0)),            # W (resident)
                pl.BlockSpec((2, fout), lambda b: (0, 0)),              # a rows
            ],
            out_specs=pl.BlockSpec((block_b, n, fout), lambda b: (b, 0, 0)),
        ),
        compiler_params=pltpu.CompilerParams(
            dimension_semantics=("parallel",)),      # shards across 2 TCs on v7x
    )(x_a, x_v, adj, W, a_rows)

    h_prime = h_prime[:bs]
    return h_prime[:, :t, :], h_prime[:, t:, :]


def _reference(x_a, x_v, adj, W, a, alpha=0.1, act=True):
    """Plain-JAX reference mirroring the PyTorch forward."""
    fout = W.shape[1]
    h = jnp.concatenate([x_a, x_v], axis=1)
    wh = h @ W
    wh1 = wh @ a[:fout, :]
    wh2 = wh @ a[fout:, :]
    e = wh1 + jnp.swapaxes(wh2, -1, -2)
    e = jnp.where(e > 0, e, alpha * e)
    att = jnp.where(adj > 0, e, jnp.full_like(e, NEG_BIG))
    att = jax.nn.softmax(att, axis=-1)
    h_prime = att @ wh
    if act:
        h_prime = jax.nn.elu(h_prime)
    t = x_a.shape[1]
    return h_prime[:, :t, :], h_prime[:, t:, :]


if __name__ == "__main__":
    key = jax.random.PRNGKey(0)
    bs, t, in_features, out_features = 2, 8, 32, 32
    n = 2 * t

    k_xa, k_xv, k_w, k_a, k_adj = jax.random.split(key, 5)

    x_a = jax.random.normal(k_xa, (bs, t, in_features), dtype=jnp.float32)
    x_v = jax.random.normal(k_xv, (bs, t, in_features), dtype=jnp.float32)

    # xavier_uniform-style deterministic init (gain = 1.414)
    gain = 1.414
    bound_w = gain * (6.0 / (in_features + out_features)) ** 0.5
    W = jax.random.uniform(k_w, (in_features, out_features),
                           minval=-bound_w, maxval=bound_w, dtype=jnp.float32)
    bound_a = gain * (6.0 / (2 * out_features + 1)) ** 0.5
    a = jax.random.uniform(k_a, (2 * out_features, 1),
                           minval=-bound_a, maxval=bound_a, dtype=jnp.float32)

    # 0/1 adjacency mask with self loops (float, as the PyTorch module uses).
    adj = (jax.random.uniform(k_adj, (bs, n, n)) > 0.5).astype(jnp.float32)
    adj = jnp.maximum(adj, jnp.eye(n, dtype=jnp.float32)[None])

    out_a, out_v = cross_gat_layer(x_a, x_v, adj, W, a, alpha=0.1, act=True)
    out_a = jax.block_until_ready(out_a)
    out_v = jax.block_until_ready(out_v)

    ref_a, ref_v = _reference(x_a, x_v, adj, W, a)
    assert jnp.allclose(out_a, ref_a, atol=1e-3, rtol=1e-3)
    assert jnp.allclose(out_v, ref_v, atol=1e-3, rtol=1e-3)

    print("KERNEL_OK")
</pallas_src>

<mosaic_0001>
module attributes {stable_mosaic.version = 11 : i64} {
  func.func @_cross_gat_kernel(%arg0: i32, %arg1: memref<2x8x32xf32, #tpu.memory_space<vmem>>, %arg2: memref<2x8x32xf32, #tpu.memory_space<vmem>>, %arg3: memref<2x16x16xf32, #tpu.memory_space<vmem>>, %arg4: memref<32x32xf32, #tpu.memory_space<vmem>>, %arg5: memref<2x32xf32, #tpu.memory_space<vmem>>, %arg6: memref<2x16x32xf32, #tpu.memory_space<vmem>>) attributes {dimension_semantics = [#tpu.dimension_semantics<parallel>], iteration_bounds = array<i64: 1>, scalar_prefetch = 0 : i64, scratch_operands = 0 : i64, tpu.core_type = #tpu.core_type<tc>, window_params = [{transform_indices = @transform_0, window_bounds = array<i64: 2, 8, 32>}, {transform_indices = @transform_1, window_bounds = array<i64: 2, 8, 32>}, {transform_indices = @transform_2, window_bounds = array<i64: 2, 16, 16>}, {pipeline_mode = #tpu.pipeline_mode<synchronous>, transform_indices = @transform_3, window_bounds = array<i64: 32, 32>}, {pipeline_mode = #tpu.pipeline_mode<synchronous>, transform_indices = @transform_4, window_bounds = array<i64: 2, 32>}, {transform_indices = @transform_5, window_bounds = array<i64: 2, 16, 32>}]} {
    %c0 = arith.constant 0 : index
    %c0_0 = arith.constant 0 : index
    %c0_1 = arith.constant 0 : index
    %0 = vector.load %arg1[%c0, %c0_0, %c0_1] : memref<2x8x32xf32, #tpu.memory_space<vmem>>, vector<2x8x32xf32>
    %c0_2 = arith.constant 0 : index
    %c0_3 = arith.constant 0 : index
    %c0_4 = arith.constant 0 : index
    %1 = vector.load %arg2[%c0_2, %c0_3, %c0_4] : memref<2x8x32xf32, #tpu.memory_space<vmem>>, vector<2x8x32xf32>
    %2 = tpu.concatenate %0, %1 in 1 : vector<2x8x32xf32>, vector<2x8x32xf32> -> vector<2x16x32xf32>
    %c0_5 = arith.constant 0 : index
    %c0_6 = arith.constant 0 : index
    %3 = vector.load %arg4[%c0_5, %c0_6] : memref<32x32xf32, #tpu.memory_space<vmem>>, vector<32x32xf32>
    %4 = vector.shape_cast %2 : vector<2x16x32xf32> to vector<32x32xf32>
    %cst = arith.constant dense<0.000000e+00> : vector<32x32xf32>
    %5 = tpu.matmul %4, %3, %cst {dimension_numbers = #tpu.dot_dimension_numbers<[1], [0], [0], [1], [0, 0, 1, 1], [], []>} : vector<32x32xf32>, vector<32x32xf32>, vector<32x32xf32> -> vector<32x32xf32>
    %6 = vector.shape_cast %5 : vector<32x32xf32> to vector<2x16x32xf32>
    %c0_7 = arith.constant 0 : index
    %c0_8 = arith.constant 0 : index
    %7 = vector.load %arg5[%c0_7, %c0_8] : memref<2x32xf32, #tpu.memory_space<vmem>>, vector<2x32xf32>
    %8 = vector.extract_strided_slice %7 {offsets = [0, 0], sizes = [1, 32], strides = [1, 1]} : vector<2x32xf32> to vector<1x32xf32>
    %9 = vector.shape_cast %8 : vector<1x32xf32> to vector<1x1x32xf32>
    %10 = vector.broadcast %9 : vector<1x1x32xf32> to vector<2x16x32xf32>
    %11 = arith.mulf %6, %10 : vector<2x16x32xf32>
    %cst_9 = arith.constant dense<0.000000e+00> : vector<2x16xf32>
    %12 = vector.multi_reduction <add>, %11, %cst_9 [2] : vector<2x16x32xf32> to vector<2x16xf32>
    %13 = vector.shape_cast %12 : vector<2x16xf32> to vector<2x16x1xf32>
    %14 = vector.extract_strided_slice %7 {offsets = [1, 0], sizes = [1, 32], strides = [1, 1]} : vector<2x32xf32> to vector<1x32xf32>
    %15 = vector.shape_cast %14 : vector<1x32xf32> to vector<1x1x32xf32>
    %16 = vector.broadcast %15 : vector<1x1x32xf32> to vector<2x16x32xf32>
    %17 = arith.mulf %6, %16 : vector<2x16x32xf32>
    %cst_10 = arith.constant dense<0.000000e+00> : vector<2x16xf32>
    %18 = vector.multi_reduction <add>, %17, %cst_10 [2] : vector<2x16x32xf32> to vector<2x16xf32>
    %19 = vector.shape_cast %18 : vector<2x16xf32> to vector<2x1x16xf32>
    %20 = vector.broadcast %13 : vector<2x16x1xf32> to vector<2x16x16xf32>
    %21 = vector.broadcast %19 : vector<2x1x16xf32> to vector<2x16x16xf32>
    %22 = arith.addf %20, %21 : vector<2x16x16xf32>
    %cst_11 = arith.constant 0.000000e+00 : f32
    %23 = vector.broadcast %cst_11 : f32 to vector<2x16x16xf32>
    %24 = arith.cmpf ogt, %22, %23 : vector<2x16x16xf32>
    %cst_12 = arith.constant 1.000000e-01 : f32
    %25 = vector.broadcast %cst_12 : f32 to vector<2x16x16xf32>
    %26 = arith.mulf %25, %22 : vector<2x16x16xf32>
    %27 = arith.select %24, %22, %26 : vector<2x16x16xi1>, vector<2x16x16xf32>
    %c0_13 = arith.constant 0 : index
    %c0_14 = arith.constant 0 : index
    %c0_15 = arith.constant 0 : index
    %28 = vector.load %arg3[%c0_13, %c0_14, %c0_15] : memref<2x16x16xf32, #tpu.memory_space<vmem>>, vector<2x16x16xf32>
    %cst_16 = arith.constant 0.000000e+00 : f32
    %29 = vector.broadcast %cst_16 : f32 to vector<2x16x16xf32>
    %30 = arith.cmpf ogt, %28, %29 : vector<2x16x16xf32>
    %cst_17 = arith.constant -9.000000e+15 : f32
    %31 = vector.broadcast %cst_17 : f32 to vector<2x16x16xf32>
    %32 = arith.select %30, %27, %31 : vector<2x16x16xi1>, vector<2x16x16xf32>
    %cst_18 = arith.constant dense<0xFF800000> : vector<2x16xf32>
    %33 = vector.multi_reduction <maximumf>, %32, %cst_18 [2] : vector<2x16x16xf32> to vector<2x16xf32>
    %34 = vector.shape_cast %33 : vector<2x16xf32> to vector<2x16x1xf32>
    %35 = vector.broadcast %34 : vector<2x16x1xf32> to vector<2x16x16xf32>
    %36 = arith.subf %32, %35 : vector<2x16x16xf32>
    %37 = math.exp %36 : vector<2x16x16xf32>
    %cst_19 = arith.constant dense<0.000000e+00> : vector<2x16xf32>
    %38 = vector.multi_reduction <add>, %37, %cst_19 [2] : vector<2x16x16xf32> to vector<2x16xf32>
    %39 = vector.shape_cast %38 : vector<2x16xf32> to vector<2x16x1xf32>
    %40 = vector.broadcast %39 : vector<2x16x1xf32> to vector<2x16x16xf32>
    %41 = arith.divf %37, %40 : vector<2x16x16xf32>
    "tpu.trace_start"() <{level = 10 : i32, message = "bij,bjo->bio"}> : () -> ()
    %cst_20 = arith.constant dense<0.000000e+00> : vector<2x16x32xf32>
    %42 = tpu.matmul %41, %6, %cst_20 {dimension_numbers = #tpu.dot_dimension_numbers<[2], [1], [1], [2], [0, 0, 0, 1, 1, 2], [0], [0]>} : vector<2x16x16xf32>, vector<2x16x32xf32>, vector<2x16x32xf32> -> vector<2x16x32xf32>
    "tpu.trace_stop"() : () -> ()
    %cst_21 = arith.constant 0.000000e+00 : f32
    %43 = vector.broadcast %cst_21 : f32 to vector<2x16x32xf32>
    %44 = arith.minimumf %42, %43 : vector<2x16x32xf32>
    %cst_22 = arith.constant 0.000000e+00 : f32
    %45 = vector.broadcast %cst_22 : f32 to vector<2x16x32xf32>
    %46 = arith.cmpf ogt, %42, %45 : vector<2x16x32xf32>
    %47 = math.exp %44 : vector<2x16x32xf32>
    %cst_23 = arith.constant 1.000000e+00 : f32
    %48 = vector.broadcast %cst_23 : f32 to vector<2x16x32xf32>
    %49 = arith.subf %47, %48 : vector<2x16x32xf32>
    %50 = arith.select %46, %42, %49 : vector<2x16x32xi1>, vector<2x16x32xf32>
    %c0_24 = arith.constant 0 : index
    %c0_25 = arith.constant 0 : index
    %c0_26 = arith.constant 0 : index
    %51 = vector.load %arg6[%c0_24, %c0_25, %c0_26] : memref<2x16x32xf32, #tpu.memory_space<vmem>>, vector<2x16x32xf32>
    tpu.vector_store %arg6[%c0_24, %c0_25, %c0_26], %50 {strides = array<i32>} : memref<2x16x32xf32, #tpu.memory_space<vmem>>, vector<2x16x32xf32>,
    return
  }
  func.func @transform_0(%arg0: i32) -> (i32, i32, i32) {
    %c0_i32 = arith.constant 0 : i32
    %c0_i32_0 = arith.constant 0 : i32
    %c0_i32_1 = arith.constant 0 : i32
    return %arg0, %c0_i32, %c0_i32_0 : i32, i32, i32
  }
  func.func @transform_1(%arg0: i32) -> (i32, i32, i32) {
    %c0_i32 = arith.constant 0 : i32
    %c0_i32_0 = arith.constant 0 : i32
    %c0_i32_1 = arith.constant 0 : i32
    return %arg0, %c0_i32, %c0_i32_0 : i32, i32, i32
  }
  func.func @transform_2(%arg0: i32) -> (i32, i32, i32) {
    %c0_i32 = arith.constant 0 : i32
    %c0_i32_0 = arith.constant 0 : i32
    %c0_i32_1 = arith.constant 0 : i32
    return %arg0, %c0_i32, %c0_i32_0 : i32, i32, i32
  }
  func.func @transform_3(%arg0: i32) -> (i32, i32) {
    %c0_i32 = arith.constant 0 : i32
    %c0_i32_0 = arith.constant 0 : i32
    %c0_i32_1 = arith.constant 0 : i32
    return %c0_i32, %c0_i32_0 : i32, i32
  }
  func.func @transform_4(%arg0: i32) -> (i32, i32) {
    %c0_i32 = arith.constant 0 : i32
    %c0_i32_0 = arith.constant 0 : i32
    %c0_i32_1 = arith.constant 0 : i32
    return %c0_i32, %c0_i32_0 : i32, i32
  }
  func.func @transform_5(%arg0: i32) -> (i32, i32, i32) {
    %c0_i32 = arith.constant 0 : i32
    %c0_i32_0 = arith.constant 0 : i32
    %c0_i32_1 = arith.constant 0 : i32
    return %arg0, %c0_i32, %c0_i32_0 : i32, i32, i32
  }
}

</mosaic_0001>

<bundles_post_ra>
// kernel: tpu_custom_call.1
= control target key start
LH: loop header
LB: loop body
LE: loop exit
PB: predicated region body
PF: predicated region fallthrough
CT: control target
= control target key end

     0   :  { %10 = vsyncpa [#allocation3], 0  ;;  %s937_s0 = inlined_call_operand.hbm [shape: f32[2,8,32], index: 0, kind: input, shape index: {}]   ;;  %s938_s1 = inlined_call_operand.hbm [shape: f32[2,8,32], index: 1, kind: input, shape index: {}]   ;;  %s939_s2 = inlined_call_operand.hbm [shape: f32[2,16,16], index: 2, kind: input, shape index: {}]   ;;  %s940_s3 = inlined_call_operand.hbm [shape: f32[32,32], index: 3, kind: input, shape index: {}]   ;;  %s941_s4 = inlined_call_operand.vmem [shape: f32[2,32], index: 4, kind: input, shape index: {}]   ;;  %s942_s5 = inlined_call_operand.hbm [shape: f32[2,16,32], index: 5, kind: output, shape index: {}]  }
   0x1   :  { %11 = vsyncpa [#allocation6], 0 }
   0x2   :  { %12 = vsyncpa [#allocation9], 0 }
   0x3   :  { %13 = vsyncpa [#allocation4], 0  ;;  %s772_s18 = smov [#allocation5]   ;;  %s773_s20 = smov [#allocation2]  }
   0x4   :  { %s31_s19 = sshll.u32 %s772_s18, 4  ;;  %s19_s21 = sshll.u32 %s773_s20, 4  ;;  %s32_s19 = int_to_ptr.vmem [resolvable:$true] %s31_s19  ;;  %s809_s21 = int_to_ptr.vmem [resolvable:$true] %s19_s21 }
   0x5   :  { %s654_s24 = scalar_lea.hbm %s938_s1, 256 }
   0x6   :  { %p655_p0 = scmp.ne.s32.totalorder %s938_s1, %s654_s24  ;;  %p658_p1 = scmp.lt.u32.totalorder %s654_s24, %s938_s1 }
   0x8   :  { %p660_p2 = pnand %p658_p1, %p655_p0 }
   0xa   :  { %663 = shalt.err (!%p660_p2)
}
   0xb   :  { %s664_s29 = scalar_lea.vmem %s32_s19, 256  ;;  %p669_p4 = scmp.lt.s32.totalorder %s32_s19, %s32_s19 }
   0xc   :  { %p665_p3 = scmp.ne.s32.totalorder %s32_s19, %s664_s29  ;;  %p670_p5 = scmp.lt.s32.totalorder %s664_s29, %s664_s29 }
   0xe   :  { %p671_p6 = por %p670_p5, %p669_p4 }
  0x10   :  { %p672_p7 = pnand %p671_p6, %p665_p3 }
  0x12   :  { %675 = shalt.err (!%p672_p7)
}
  0x13   :  { %s774_s30 = smov 128   ;;  %s775_s6 = smov 8  }
  0x14   :  { %37 = dma.hbm_to_vmem [thread:$0]  %s938_s1, 256, %s32_s19, [#allocation6], %s774_s30, %s774_s30, %s775_s6  }
  0x15   :  { %s676_s11 = scalar_lea.hbm %s937_s0, 256 }
  0x16   :  { %p677_p8 = scmp.ne.s32.totalorder %s937_s0, %s676_s11  ;;  %p680_p9 = scmp.lt.u32.totalorder %s676_s11, %s937_s0 }
  0x18   :  { %p682_p10 = pnand %p680_p9, %p677_p8 }
  0x1a   :  { %685 = shalt.err (!%p682_p10)
}
  0x1b   :  { %s686_s16 = scalar_lea.vmem %s809_s21, 256  ;;  %p691_p12 = scmp.lt.s32.totalorder %s809_s21, %s809_s21 }
  0x1c   :  { %p687_p11 = scmp.ne.s32.totalorder %s809_s21, %s686_s16  ;;  %p692_p13 = scmp.lt.s32.totalorder %s686_s16, %s686_s16 }
  0x1e   :  { %p693_p0 = por %p692_p13, %p691_p12 }
  0x20   :  { %p694_p1 = pnand %p693_p0, %p687_p11 }
  0x22   :  { %697 = shalt.err (!%p694_p1)
}
  0x23   :  { %25 = dma.hbm_to_vmem [thread:$0]  %s937_s0, 256, %s809_s21, [#allocation3], %s774_s30, %s774_s30, %s775_s6  }
  0x24   :  { %s776_s18 = smov [#allocation7]   ;;  %s777_s20 = smov [#allocation8]  }
  0x25   :  { %s43_s19 = sshll.u32 %s776_s18, 4  ;;  %s55_s22 = sshll.u32 %s777_s20, 4  ;;  %s44_s19 = int_to_ptr.vmem [resolvable:$true] %s43_s19  ;;  %s846_s22 = int_to_ptr.vmem [resolvable:$true] %s55_s22 }
  0x26   :  { %s698_s25 = scalar_lea.hbm %s939_s2, 512 }
  0x27   :  { %p699_p2 = scmp.ne.s32.totalorder %s939_s2, %s698_s25  ;;  %p702_p3 = scmp.lt.u32.totalorder %s698_s25, %s939_s2 }
  0x29   :  { %p704_p4 = pnand %p702_p3, %p699_p2 }
  0x2b   :  { %707 = shalt.err (!%p704_p4)
}
  0x2c   :  { %s708_s0 = scalar_lea.vmem %s44_s19, 512  ;;  %p713_p6 = scmp.lt.s32.totalorder %s44_s19, %s44_s19 }
  0x2d   :  { %p709_p5 = scmp.ne.s32.totalorder %s44_s19, %s708_s0  ;;  %p714_p7 = scmp.lt.s32.totalorder %s708_s0, %s708_s0 }
  0x2f   :  { %p715_p8 = por %p714_p7, %p713_p6 }
  0x31   :  { %p716_p9 = pnand %p715_p8, %p709_p5 }
  0x33   :  { %719 = shalt.err (!%p716_p9)
}
  0x34   :  { %49 = dma.hbm_to_vmem [thread:$0]  %s939_s2, 512, %s44_s19, [#allocation6], %s774_s30, %s774_s30, %s775_s6  }
  0x35   :  { %s720_s10 = scalar_lea.hbm %s940_s3, 512 }
  0x36   :  { %p721_p10 = scmp.ne.s32.totalorder %s940_s3, %s720_s10  ;;  %p724_p11 = scmp.lt.u32.totalorder %s720_s10, %s940_s3 }
  0x38   :  { %p726_p12 = pnand %p724_p11, %p721_p10 }
  0x3a   :  { %729 = shalt.err (!%p726_p12)
}
  0x3b   :  { %s730_s15 = scalar_lea.vmem %s846_s22, 512  ;;  %p735_p0 = scmp.lt.s32.totalorder %s846_s22, %s846_s22 }
  0x3c   :  { %p731_p13 = scmp.ne.s32.totalorder %s846_s22, %s730_s15  ;;  %p736_p1 = scmp.lt.s32.totalorder %s730_s15, %s730_s15 }
  0x3e   :  { %p737_p2 = por %p736_p1, %p735_p0 }
  0x40   :  { %p738_p3 = pnand %p737_p2, %p731_p13 }
  0x42   :  { %741 = shalt.err (!%p738_p3)
}
  0x43   :  { %61 = dma.hbm_to_vmem [thread:$0]  %s940_s3, 512, %s846_s22, [#allocation9], %s774_s30, %s774_s30, %s775_s6  }
  0x44   :  { %764 = dma.done.wait [#allocation3], 256  }
  0x45   :  { %765 = vsyncadd [#allocation3], 4294967040 }
  0x46   :  { %766 = dma.done.wait [#allocation6], 768  }
  0x47   :  { %767 = vsyncadd [#allocation6], 4294966528 }
  0x48   :  { %768 = dma.done.wait [#allocation9], 512  }
  0x49   :  { %769 = vsyncadd [#allocation9], 4294966784  ;;  %vm84_vm0 = vcmask 261120   ;;  %v80_v0 = vld [vmem:[#allocation8] sm:$0xff]  ;;  %v81_v1 = vld [vmem:[#allocation8 + $0x8] sm:$0xff]  ;;  %v183_v10 = vlaneseq  ;;  %vm238_vm1 = vcmask 130112  }
  0x4a   :  { %v82_v2 = vld [vmem:[#allocation8 + $0x10] sm:$0xff]  ;;  %v607_v3 = vpack.c.bf16 %v81_v1, %v80_v0  ;;  %v83_v4 = vld [vmem:[#allocation8 + $0x18] sm:$0xff]  ;;  %v76_v5 = vld [vmem:[#allocation2] sm:$0xff]  ;;  %vm297_vm6 = vcmask 130048  }
  0x4b   :  { %v611_v6 = vpack.c.bf16 %v83_v4, %v82_v2  ;;  %587 = vmatprep.mubr.msk.f32.mxu0 %vm84_vm0, %v76_v5  ;;  %v78_v7 = vld [vmem:[#allocation5] sm:$0xff]  ;;  %v77_v8 = vld [vmem:[#allocation2 + $0x8] sm:$0xff]  ;;  %v79_v9 = vld [vmem:[#allocation5 + $0x8] sm:$0xff]  ;;  %v184_v11 = vshrl.u32 %v183_v10, 7  ;;  %v228_v39 = vand.u32 127, %v183_v10 }
  0x4c   :  { %608 = vmatprep.subr.bf16.mxu0 %v607_v3  ;;  %v182_v14 = vld [vmem:[%s941_s4] sm:$0x3]  ;;  %v286_v49 = vld [vmem:[#allocation7 + $0x8] sm:$0xff]  ;;  %v288_v61 = vld [vmem:[#allocation7 + $0x18] sm:$0xff]  ;;  %s778_s4 = smov [#allocation10]  }
  0x4d   :  { %610 = vmatpush3.bf16.msra.mxu0 %v607_v3  ;;  %v205_v12 = vsub.s32 1, %v184_v11  ;;  %v185_v13 = vsub.s32 0, %v184_v11  ;;  %v233_v40 = vadd.s32 4294967288, %v228_v39  ;;  %v231_v44 = vsub.s32 %v228_v39, %v184_v11  ;;  %v285_v50 = vld [vmem:[#allocation7] sm:$0xff]  ;;  %v287_v62 = vld [vmem:[#allocation7 + $0x10] sm:$0xff]  ;;  %s537_s17 = sshll.u32 %s778_s4, 4  ;;  %s538_s17 = int_to_ptr.vmem [resolvable:$true] %s537_s17 }
  0x4e   :  { %612 = vmatprep.subr.bf16.mxu0 %v611_v6  ;;  %vm290_vm2 = vcmp.gt.f32.partialorder %v286_v49, 0.0  ;;  %vm289_vm3 = vcmp.gt.f32.partialorder %v285_v50, 0.0  ;;  %vm292_vm7 = vcmp.gt.f32.partialorder %v288_v61, 0.0  ;;  %vm291_vm8 = vcmp.gt.f32.partialorder %v287_v62, 0.0  ;;  %s742_s18 = scalar_lea.vmem %s538_s17, 512  ;;  %p747_p5 = scmp.lt.s32.totalorder %s538_s17, %s538_s17 }
  0x4f   :  { %v206_v15 = vrot.slane %v182_v14, %v205_v12  ;;  %v186_v16 = vrot.slane %v182_v14, %v185_v13  ;;  %v236_v43 = vsub.s32 %v233_v40, %v184_v11  ;;  %p743_p4 = scmp.ne.s32.totalorder %s538_s17, %s742_s18  ;;  %p748_p6 = scmp.lt.s32.totalorder %s742_s18, %s742_s18 }
  0x51   :  { %614 = vmatpush3.bf16.msra.mxu0 %v611_v6  ;;  %p749_p7 = por %p748_p6, %p747_p5 }
  0x53   :  { %p750_p8 = pnand %p749_p7, %p743_p4 }
  0x54   :  { %588 = vmatmul.mubr.msk.f32.vlgmr.msra.gmra.mrb[0].mxu0 %vm84_vm0, %v78_v7 }
  0x55   :  { %590 = vmatprep.mubr.msk.f32.mxu0 %vm84_vm0, %v77_v8 }
  0x58   :  { %591 = vmatmul.mubr.msk.f32.gmra.mrb[2].mxu0 %vm84_vm0, %v79_v9 }
 0x127   :  { %v589_v17 = vpop.f32.mrb[0].mxu0 }
 0x128   :  { %v163_v18 = vpop.f32.mrb[1].mxu0  ;;  %v208_v19 = vmul.f32 %v589_v17, %v206_v15  ;;  %v188_v20 = vmul.f32 %v589_v17, %v186_v16 }
 0x129   :  { %v615_v21 = vpack.c.bf16 %v589_v17, %v163_v18  ;;  %v207_v24 = vmul.f32 %v206_v15, %v163_v18  ;;  %v187_v25 = vmul.f32 %v186_v16, %v163_v18 }
 0x12a   :  { %v214_v22 = vsel %vm84_vm0, %v208_v19, 0.0  ;;  %v194_v23 = vsel %vm84_vm0, %v188_v20, 0.0 }
 0x12b   :  { %215 = vadd.xlane.f32.xlu0 %v214_v22  ;;  %195 = vadd.xlane.f32.xlu1 %v194_v23  ;;  %v592_v26 = vpop.f32.mrb[2].mxu0  ;;  %v211_v31 = vsel %vm84_vm0, %v207_v24, 0.0  ;;  %v191_v32 = vsel %vm84_vm0, %v187_v25, 0.0 }
 0x12c   :  { %616 = vmatprep.subr.bf16.mxu1 %v615_v21  ;;  %v173_v27 = vpop.f32.mrb[3].mxu0  ;;  %v210_v28 = vmul.f32 %v592_v26, %v206_v15  ;;  %v190_v36 = vmul.f32 %v592_v26, %v186_v16 }
 0x12d   :  { %618 = vmatpush3.bf16.msra.mxu1 %v615_v21  ;;  %v209_v29 = vmul.f32 %v206_v15, %v173_v27  ;;  %v892_v30 = vpack.c.bf16 %v592_v26, %v173_v27  ;;  %v189_v35 = vmul.f32 %v186_v16, %v173_v27 }
 0x12e   :  { %v220_v33 = vsel %vm84_vm0, %v210_v28, 0.0  ;;  %v200_v37 = vsel %vm84_vm0, %v190_v36, 0.0 }
 0x12f   :  { %212 = vadd.xlane.f32.xlu0 %v211_v31  ;;  %192 = vadd.xlane.f32.xlu1 %v191_v32  ;;  %v217_v34 = vsel %vm84_vm0, %v209_v29, 0.0  ;;  %v197_v38 = vsel %vm84_vm0, %v189_v35, 0.0 }
 0x130   :  { %620 = vmatprep.subr.bf16.mxu1 %v892_v30 }
 0x133   :  { %221 = vadd.xlane.f32.xlu1 %v220_v33  ;;  %218 = vadd.xlane.f32.xlu0 %v217_v34 }
 0x137   :  { %201 = vadd.xlane.f32.xlu1 %v200_v37  ;;  %198 = vadd.xlane.f32.xlu0 %v197_v38 }
 0x1b8   :  { %v216_v41 = vpop.xlane.xlu0 %215  ;;  %v196_v42 = vpop.xlane.xlu1 %195 }
 0x1b9   :  { %v237_v47 = vrot.slane %v216_v41, %v236_v43 }
 0x1bc   :  { %v213_v45 = vpop.xlane.xlu0 %212  ;;  %v193_v46 = vpop.xlane.xlu1 %192 }
 0x1bd   :  { %v232_v48 = vrot.slane %v213_v45, %v231_v44 }
 0x1bf   :  { %v239_v51 = vsel %vm238_vm1, %v237_v47, %v232_v48 }
 0x1c0   :  { %v270_v52 = vadd.f32 %v239_v51, %v196_v42  ;;  %v269_v53 = vadd.f32 %v239_v51, %v193_v46  ;;  %v222_v54 = vpop.xlane.xlu1 %221  ;;  %v219_v55 = vpop.xlane.xlu0 %218 }
 0x1c1   :  { %v247_v56 = vrot.slane %v222_v54, %v236_v43  ;;  %v243_v57 = vrot.slane %v219_v55, %v231_v44 }
 0x1c2   :  { %v277_v58 = vmul.f32 0.1, %v269_v53  ;;  %vm274_vm4 = vcmp.gt.f32.partialorder %v270_v52, 0.0  ;;  %v278_v59 = vmul.f32 0.1, %v270_v52  ;;  %vm273_vm5 = vcmp.gt.f32.partialorder %v269_v53, 0.0 }
 0x1c3   :  { %v248_v60 = vsel %vm238_vm1, %v247_v56, %v243_v57 }
 0x1c4   :  { %v202_v63 = vpop.xlane.xlu1 %201  ;;  %v199_v0 = vpop.xlane.xlu0 %198  ;;  %v282_v1 = vsel %vm274_vm4, %v270_v52, %v278_v59  ;;  %v281_v2 = vsel %vm273_vm5, %v269_v53, %v277_v58 }
 0x1c5   :  { %v272_v3 = vadd.f32 %v248_v60, %v202_v63  ;;  %v271_v4 = vadd.f32 %v248_v60, %v199_v0  ;;  %v294_v5 = vsel %vm290_vm2, %v282_v1, -9e+15  ;;  %v293_v6 = vsel %vm289_vm3, %v281_v2, -9e+15 }
 0x1c6   :  { %v301_v7 = vsel %vm297_vm6, %v294_v5, -inf  ;;  %v298_v8 = vsel %vm297_vm6, %v293_v6, -inf }
 0x1c7   :  { %v280_v9 = vmul.f32 0.1, %v272_v3  ;;  %v279_v10 = vmul.f32 0.1, %v271_v4  ;;  %302 = vmax.xlane.f32.xlu1 %v301_v7  ;;  %299 = vmax.xlane.f32.xlu0 %v298_v8  ;;  %vm276_vm9 = vcmp.gt.f32.partialorder %v272_v3, 0.0  ;;  %vm275_vm10 = vcmp.gt.f32.partialorder %v271_v4, 0.0 }
 0x1c9   :  { %v284_v11 = vsel %vm276_vm9, %v272_v3, %v280_v9  ;;  %v283_v12 = vsel %vm275_vm10, %v271_v4, %v279_v10 }
 0x1ca   :  { %v296_v13 = vsel %vm292_vm7, %v284_v11, -9e+15  ;;  %v295_v14 = vsel %vm291_vm8, %v283_v12, -9e+15 }
 0x1cb   :  { %v307_v15 = vsel %vm297_vm6, %v296_v13, -inf  ;;  %v304_v16 = vsel %vm297_vm6, %v295_v14, -inf }
 0x1cc   :  { %308 = vmax.xlane.f32.xlu1 %v307_v15  ;;  %305 = vmax.xlane.f32.xlu0 %v304_v16 }
 0x254   :  { %v303_v17 = vpop.xlane.xlu1 %302  ;;  %v300_v18 = vpop.xlane.xlu0 %299 }
 0x255   :  { %v311_v19 = vsub.f32 %v294_v5, %v303_v17  ;;  %v310_v20 = vsub.f32 %v293_v6, %v300_v18 }
 0x257   :  { %v316_v21 = vmul.f32 1.442695, %v311_v19  ;;  %v314_v22 = vmul.f32 1.442695, %v310_v20 }
 0x259   :  { %630 = vpow2.f32 %v316_v21  ;;  %v309_v23 = vpop.xlane.xlu1 %308  ;;  %v306_v24 = vpop.xlane.xlu0 %305 }
 0x25a   :  { %632 = vpow2.f32 %v314_v22  ;;  %v313_v25 = vsub.f32 %v296_v13, %v309_v23  ;;  %v312_v26 = vsub.f32 %v295_v14, %v306_v24 }
 0x25c   :  { %v320_v27 = vmul.f32 1.442695, %v313_v25  ;;  %v318_v28 = vmul.f32 1.442695, %v312_v26 }
 0x25e   :  { %634 = vpow2.f32 %v320_v27 }
 0x25f   :  { %636 = vpow2.f32 %v318_v28 }
 0x263   :  { %v631_v29 = vpop.eup %630 }
 0x264   :  { %v633_v31 = vpop.eup %632  ;;  %v325_v32 = vsel %vm297_vm6, %v631_v29, 0.0 }
 0x265   :  { %326 = vadd.xlane.f32.xlu1 %v325_v32  ;;  %v322_v33 = vsel %vm297_vm6, %v633_v31, 0.0 }
 0x266   :  { %323 = vadd.xlane.f32.xlu0 %v322_v33 }
 0x268   :  { %v635_v34 = vpop.eup %634 }
 0x269   :  { %v637_v35 = vpop.eup %636  ;;  %v331_v36 = vsel %vm297_vm6, %v635_v34, 0.0 }
 0x26a   :  { %332 = vadd.xlane.f32.xlu1 %v331_v36  ;;  %v328_v37 = vsel %vm297_vm6, %v637_v35, 0.0 }
 0x26b   :  { %329 = vadd.xlane.f32.xlu0 %v328_v37 }
 0x2f2   :  { %v327_v38 = vpop.xlane.xlu1 %326 }
 0x2f3   :  { %638 = vrcp.f32 %v327_v38  ;;  %v324_v39 = vpop.xlane.xlu0 %323 }
 0x2f4   :  { %640 = vrcp.f32 %v324_v39 }
 0x2f7   :  { %v333_v40 = vpop.xlane.xlu1 %332 }
 0x2f8   :  { %642 = vrcp.f32 %v333_v40  ;;  %v330_v41 = vpop.xlane.xlu0 %329 }
 0x2f9   :  { %644 = vrcp.f32 %v330_v41 }
 0x2fd   :  { %v639_v42 = vpop.eup %638 }
 0x2fe   :  { %v641_v43 = vpop.eup %640  ;;  %v337_v44 = vmul.f32 %v639_v42, %v631_v29 }
 0x2ff   :  { %v335_v45 = vmul.f32 %v641_v43, %v633_v31 }
 0x301   :  { %597 = vmatprep.mubr.msk.f32.mxu1 %vm297_vm6, %v335_v45 }
 0x302   :  { %v643_v46 = vpop.eup %642  ;;  %598 = vmatmul.mubr.msk.f32.vlgmr.msra.gmra.mrb[0].mxu1 %vm297_vm6, %v337_v44 }
 0x303   :  { %v645_v47 = vpop.eup %644  ;;  %v341_v48 = vmul.f32 %v643_v46, %v635_v34  ;;  %622 = vmatpush3.bf16.msra.mxu1 %v892_v30 }
 0x304   :  { %v339_v49 = vmul.f32 %v645_v47, %v637_v35 }
 0x306   :  { %604 = vmatprep.mubr.msk.f32.mxu1 %vm297_vm6, %v339_v49 }
 0x307   :  { %605 = vmatmul.mubr.msk.f32.vlgmr.msra.gmra.mrb[2].mxu1 %vm297_vm6, %v341_v48 }
 0x3d5   :  { %v599_v50 = vpop.f32.mrb[0].mxu1 }
 0x3d6   :  { %v505_v51 = vmin.f32 %v599_v50, 0.0  ;;  %v414_v52 = vpop.f32.mrb[1].mxu1  ;;  %vm509_vm11 = vcmp.gt.f32.partialorder %v599_v50, 0.0 }
 0x3d7   :  { %v504_v53 = vmin.f32 %v414_v52, 0.0  ;;  %vm508_vm12 = vcmp.gt.f32.partialorder %v414_v52, 0.0 }
 0x3d8   :  { %v514_v54 = vmul.f32 1.442695, %v505_v51 }
 0x3d9   :  { %v512_v55 = vmul.f32 1.442695, %v504_v53 }
 0x3da   :  { %646 = vpow2.f32 %v514_v54  ;;  %v606_v56 = vpop.f32.mrb[2].mxu1 }
 0x3db   :  { %648 = vpow2.f32 %v512_v55  ;;  %v507_v57 = vmin.f32 %v606_v56, 0.0  ;;  %v495_v58 = vpop.f32.mrb[3].mxu1  ;;  %vm511_vm13 = vcmp.gt.f32.partialorder %v606_v56, 0.0 }
 0x3dc   :  { %v506_v59 = vmin.f32 %v495_v58, 0.0  ;;  %vm510_vm14 = vcmp.gt.f32.partialorder %v495_v58, 0.0 }
 0x3dd   :  { %v518_v60 = vmul.f32 1.442695, %v507_v57 }
 0x3de   :  { %v516_v61 = vmul.f32 1.442695, %v506_v59 }
 0x3df   :  { %650 = vpow2.f32 %v518_v60 }
 0x3e0   :  { %652 = vpow2.f32 %v516_v61 }
 0x3e4   :  { %v647_v30 = vpop.eup %646 }
 0x3e5   :  { %v649_v62 = vpop.eup %648  ;;  %v560_v63 = vadd.f32 -1.0, %v647_v30 }
 0x3e6   :  { %v559_v0 = vadd.f32 -1.0, %v649_v62 }
 0x3e7   :  { %v525_v1 = vsel %vm509_vm11, %v599_v50, %v560_v63 }
 0x3e8   :  { %529 = vst.msk [vmem:[#allocation10 + $0x8] sm:$0xff] %vm84_vm0, %v525_v1  ;;  %v524_v2 = vsel %vm508_vm12, %v414_v52, %v559_v0 }
 0x3e9   :  { %v651_v3 = vpop.eup %650  ;;  %528 = vst.msk [vmem:[#allocation10] sm:$0xff] %vm84_vm0, %v524_v2 }
 0x3ea   :  { %v653_v4 = vpop.eup %652  ;;  %v562_v5 = vadd.f32 -1.0, %v651_v3 }
 0x3eb   :  { %v561_v6 = vadd.f32 -1.0, %v653_v4 }
 0x3ec   :  { %v527_v7 = vsel %vm511_vm13, %v606_v56, %v562_v5 }
 0x3ed   :  { %531 = vst.msk [vmem:[#allocation10 + $0x18] sm:$0xff] %vm84_vm0, %v527_v7  ;;  %v526_v8 = vsel %vm510_vm14, %v495_v58, %v561_v6 }
 0x3ee   :  { %530 = vst.msk [vmem:[#allocation10 + $0x10] sm:$0xff] %vm84_vm0, %v526_v8 }
 0x3ef   :  { %753 = shalt.err (!%p750_p8)
}
 0x3f0   :  { %s754_s22 = scalar_lea.hbm %s942_s5, 512 }
 0x3f1   :  { %p755_p9 = scmp.ne.s32.totalorder %s942_s5, %s754_s22  ;;  %p758_p10 = scmp.lt.u32.totalorder %s754_s22, %s942_s5 }
 0x3f3   :  { %p760_p11 = pnand %p758_p10, %p755_p9 }
 0x3f5   :  { %763 = shalt.err (!%p760_p11)
}
 0x3f6   :  { %543 = dma.vmem_to_hbm [thread:$0]  %s538_s17, 512, %s942_s5, [#allocation4], %s774_s30, %s774_s30, %s775_s6  }
 0x3f7   :  { %770 = dma.done.wait [#allocation4], 512  }
 0x3f8   :  { %771 = vsyncadd [#allocation4], 4294966784 }
 0x3f9   :  { %547 = vsyncpa [#allocation3], 1 }
 0x3fa   :  { %548 = vsyncpa [#allocation6], 1 }
 0x3fb   :  { %549 = vsyncpa [#allocation9], 1 }
 0x3fc   :  { %550 = vsyncpa [#allocation4], 1 }

</bundles_post_ra>
